<compile_context>
chip_gen: v7x
topology: tpu7x:2x2x1
jax: 0.10.0
libtpu: 0.0.40
codegen_flags: <defaults>
</compile_context>

<pallas_src>
import functools

import jax
import jax.numpy as jnp
from jax import lax
from jax.experimental import pallas as pl
from jax.experimental.pallas import tpu as pltpu

SMOOTH = 1.0          # BinaryDiceLoss(smooth=1)
_LANES = 128
_ROW_ALIGN = 32       # satisfies f32 (8) / bf16 (16) / int8 (32) sublane tiling


def _dice_stats_kernel(x_ref, t_ref, out_ref, acc_ref, *,
                       hw, needs_valid, needs_guard):
    """Per-(p, n) accumulation of dice statistics over HW tiles.

    x_ref  : (1, C, T, 128) logits tile, native dtype (f32 / bf16)
    t_ref  : (1, 1, T, 128) labels tile (int8 / int32; -1 marks lane padding)
    out_ref: (1, 1, 8, C)   f32 stats, rows 0/1/2 = intersection / prob-sum / mask-sum
    acc_ref: (8, C, 128)    f32 running per-lane partial sums
    """
    k = pl.program_id(2)

    @pl.when(k == 0)
    def _init():
        acc_ref[...] = jnp.zeros_like(acc_ref)

    C = x_ref.shape[1]
    T = x_ref.shape[2]

    t = t_ref[0, 0].astype(jnp.int32)                      # (T, 128)
    zero = jnp.zeros((T, _LANES), jnp.float32)

    if needs_valid:
        # Global pixel index of every (sublane, lane) position in this tile;
        # pixels >= HW are wrapper lane-padding or out-of-bounds block rows.
        row0 = (pl.program_id(0) * pl.num_programs(2) + k) * T
        row_i = lax.broadcasted_iota(jnp.int32, (T, _LANES), 0)
        lane_i = lax.broadcasted_iota(jnp.int32, (T, _LANES), 1)
        valid = (row0 + row_i) * _LANES + lane_i < hw       # (T, 128) bool
    else:
        valid = None

    # Pass 1: per-pixel max over classes.  The class axis is a leading
    # (across-vreg) axis, so these are plain VPU maxes, not XLU reductions.
    m = x_ref[0, 0].astype(jnp.float32)
    for c in range(1, C):
        m = jnp.maximum(m, x_ref[0, c].astype(jnp.float32))

    # Pass 2: exponentials (EUP) + softmax denominator.  Each e_c is kept live
    # (one C-sized f32 temporary) so exp is not recomputed in pass 3.
    e = []
    denom = None
    for c in range(C):
        e_c = jnp.exp(x_ref[0, c].astype(jnp.float32) - m)
        if needs_guard:
            # Rows past the array end hold stale VMEM (possibly NaN/Inf):
            # select, never multiply, so garbage cannot propagate.
            e_c = jnp.where(valid, e_c, zero)
        e.append(e_c)
        denom = e_c if denom is None else denom + e_c

    inv = pl.reciprocal(denom, approx=True)                 # EUP slot
    if needs_valid:
        inv = jnp.where(valid, inv, zero)                   # drop padded pixels from psum

    one = jnp.ones((T, _LANES), jnp.float32)

    # Pass 3: per-class statistics, reduced over the sublane axis only; the
    # 128-lane reduce happens once per (p, n) in the finalize branch.
    for c in range(C):
        p_c = e[c] * inv                                    # zero at padded / OOB pixels
        hit = t == c
        if needs_guard:                                     # garbage labels in OOB rows
            hit = jnp.logical_and(hit, valid)
        acc_ref[0, c:c + 1, :] += jnp.sum(jnp.where(hit, p_c, zero),
                                          axis=0, keepdims=True)
        acc_ref[1, c:c + 1, :] += jnp.sum(p_c, axis=0, keepdims=True)
        acc_ref[2, c:c + 1, :] += jnp.sum(jnp.where(hit, one, zero),
                                          axis=0, keepdims=True)

    @pl.when(k == pl.num_programs(2) - 1)
    def _finalize():
        out_ref[0, 0] = jnp.sum(acc_ref[...], axis=2)       # (8, C), cross-lane once


def _vmem_budget():
    cap = 64 * 1024 * 1024
    have_info = False
    try:
        info = pltpu.get_tpu_info()
        cap = int(getattr(info, "vmem_capacity_bytes", cap))
        have_info = True
    except Exception:
        pass
    limit = min(int(cap * 0.70), 64 * 1024 * 1024)          # ~45 MiB v7x, 64 MiB v5e/v6e
    two_tensorcores = have_info and cap <= 96 * 1024 * 1024  # v7x: 64 MiB VMEM, 2 TCs
    return limit, two_tensorcores


def _plan_tiles(C, rows, in_bytes, tgt_bytes, vmem_limit, tile_rows, num_hw_splits):
    """Pick (t_rows, P, K) covering `rows` rows of 128 pixels each."""
    # Steady-state VMEM per row of 128 pixels: double-buffered logits + label
    # blocks, the per-class exp slices (f32) and a few (T, 128) f32/i32 temps.
    bytes_per_row = _LANES * (2 * C * in_bytes + 2 * tgt_bytes + 4 * C + 32)
    budget = int(vmem_limit * 0.6)
    cap = budget // max(bytes_per_row, 1)
    if tile_rows is not None:
        cap = min(cap, tile_rows)
    cap = int(max(_ROW_ALIGN, min(cap, 4096)))
    if rows <= cap:
        return rows, 1, 1                   # one full-extent block per batch element
    cap = (cap // _ROW_ALIGN) * _ROW_ALIGN
    P = num_hw_splits if rows >= 2 * _ROW_ALIGN * num_hw_splits else 1
    # Prefer a tile that exactly divides the row count (no partial blocks).
    for p_try in sorted({P, 1}, reverse=True):
        for cand in range(cap, max(_ROW_ALIGN, cap // 2) - 1, -_ROW_ALIGN):
            if rows % (cand * p_try) == 0:
                return cand, p_try, rows // (cand * p_try)
    # Fall back to a partial trailing block (masked in the kernel).  P stays 1
    # so the last block is never entirely out of bounds.
    return cap, 1, pl.cdiv(rows, cap)


def multiclass_dice_loss(logits_nchw, target_nhw, smooth=SMOOTH, *,
                         tile_rows=None, num_hw_splits=None):
    """Forward pass of MultiClassDiceLoss.

    weight / ignore_index are unused in the reference forward, matching the
    PyTorch module.
    """
    N, C, H, W = logits_nchw.shape
    HW = H * W

    if logits_nchw.dtype not in (jnp.float32, jnp.bfloat16):
        logits_nchw = logits_nchw.astype(jnp.float32)

    vmem_limit, two_tensorcores = _vmem_budget()
    if num_hw_splits is None:
        # The HW split only pays off on the two-TensorCore generation and only
        # when the batch axis cannot occupy both cores.
        num_hw_splits = 2 if (two_tensorcores and N == 1) else 1

    # Labels: bucket anything outside [0, C) (e.g. ignore_index=255) into class
    # C so it still contributes to the softmax-probability sum but never to a
    # class mask (reference semantics); narrow to int8 when it fits.
    tgt_dtype = jnp.int8 if C <= 126 else jnp.int32
    t = jnp.where((target_nhw >= 0) & (target_nhw < C), target_nhw, C)
    t = t.astype(tgt_dtype).reshape(N, 1, HW)
    x = logits_nchw.reshape(N, C, HW)

    rows = pl.cdiv(HW, _LANES)
    hw_pad = rows * _LANES
    if hw_pad != HW:
        # Only the final partial 128-lane row is padded; anything beyond is
        # handled by the in-kernel validity mask (no full-coverage copies).
        x = jnp.pad(x, ((0, 0), (0, 0), (0, hw_pad - HW)))
        t = jnp.pad(t, ((0, 0), (0, 0), (0, hw_pad - HW)), constant_values=-1)
    x = x.reshape(N, C, rows, _LANES)
    t = t.reshape(N, 1, rows, _LANES)

    t_rows, P, K = _plan_tiles(C, rows, x.dtype.itemsize, t.dtype.itemsize,
                               vmem_limit, tile_rows, num_hw_splits)
    needs_guard = P * K * t_rows != rows            # logits blocks read past the row end
    needs_valid = needs_guard or (P * K * t_rows * _LANES != HW)

    kernel = functools.partial(_dice_stats_kernel, hw=HW,
                               needs_valid=needs_valid, needs_guard=needs_guard)

    cost = pl.CostEstimate(
        flops=12 * N * C * HW,
        transcendentals=N * C * HW,
        bytes_accessed=(x.size * x.dtype.itemsize + t.size * t.dtype.itemsize
                        + P * N * 8 * C * 4),
    )

    stats = pl.pallas_call(
        kernel,
        out_shape=jax.ShapeDtypeStruct((P, N, 8, C), jnp.float32),
        grid_spec=pltpu.PrefetchScalarGridSpec(
            num_scalar_prefetch=0,
            grid=(P, N, K),
            in_specs=[
                pl.BlockSpec((1, C, t_rows, _LANES),
                             lambda p, n, k: (n, 0, p * K + k, 0)),
                pl.BlockSpec((1, 1, t_rows, _LANES),
                             lambda p, n, k: (n, 0, p * K + k, 0)),
            ],
            out_specs=pl.BlockSpec((1, 1, 8, C), lambda p, n, k: (p, n, 0, 0)),
            scratch_shapes=[pltpu.VMEM((8, C, _LANES), jnp.float32)],
        ),
        compiler_params=pltpu.CompilerParams(
            dimension_semantics=("parallel", "parallel", "arbitrary"),
            vmem_limit_bytes=vmem_limit,
        ),
        cost_estimate=cost,
    )(x, t)

    stats = jnp.sum(stats, axis=0)                  # (N, 8, C): sum HW-split partials
    inter, psum, msum = stats[:, 0, :], stats[:, 1, :], stats[:, 2, :]

    # BinaryDiceLoss per class: 1 - dice_eff.sum()/bs, then averaged over classes.
    dice = (2.0 * inter + smooth) / (psum + msum + smooth)        # (N, C)
    per_class_loss = 1.0 - jnp.sum(dice, axis=0) / N              # (C,)
    return jnp.sum(per_class_loss) / C


def _reference_loss(logits, target, smooth=SMOOTH):
    N, C, H, W = logits.shape
    p = jax.nn.softmax(logits.astype(jnp.float32), axis=1)
    total = 0.0
    for i in range(C):
        inp = p[:, i].reshape(N, -1)
        tgt = (target == i).reshape(N, -1).astype(jnp.float32)
        dice = (2.0 * jnp.sum(inp * tgt, axis=1) + smooth) / (
            jnp.sum(inp, axis=1) + jnp.sum(tgt, axis=1) + smooth)
        total += 1.0 - jnp.sum(dice) / N
    return total / C


def _check(name, loss, ref, tol):
    err = abs(float(loss) - float(ref))
    assert err < tol, (name, float(loss), float(ref), err)


if __name__ == "__main__":
    key = jax.random.PRNGKey(0)
    keys = jax.random.split(key, 8)

    # 1) Canonical small shape (single full-extent block, no masking), f32.
    N, C, H, W = 2, 4, 16, 16
    logits = jax.random.normal(keys[0], (N, C, H, W), dtype=jnp.float32)
    target = jax.random.randint(keys[1], (N, H, W), 0, C, dtype=jnp.int32)
    loss = jax.block_until_ready(multiclass_dice_loss(logits, target))
    _check("f32_single_block", loss, _reference_loss(logits, target), 2e-3)

    # 2) bf16 logits, forced multi-tile + HW-split path (divisor tiling, no
    #    padding): exercises scratch accumulation over K and per-split sums.
    logits2 = jax.random.normal(keys[2], (2, 4, 128, 128),
                                dtype=jnp.float32).astype(jnp.bfloat16)
    target2 = jax.random.randint(keys[3], (2, 128, 128), 0, 4, dtype=jnp.int32)
    loss2 = jax.block_until_ready(
        multiclass_dice_loss(logits2, target2, tile_rows=32, num_hw_splits=2))
    _check("bf16_multi_tile", loss2, _reference_loss(logits2, target2), 2e-3)

    # 3) Ragged spatial size (79x81) + forced small tiles: exercises the
    #    partial-lane pad, the partial trailing row block and the in-kernel
    #    validity mask (needs_valid + needs_guard) with int8 labels.
    logits3 = jax.random.normal(keys[4], (1, 5, 79, 81),
                                dtype=jnp.float32).astype(jnp.bfloat16)
    target3 = jax.random.randint(keys[5], (1, 79, 81), 0, 5, dtype=jnp.int32)
    loss3 = jax.block_until_ready(
        multiclass_dice_loss(logits3, target3, tile_rows=32, num_hw_splits=1))
    _check("bf16_ragged_guard", loss3, _reference_loss(logits3, target3), 2e-3)

    # 4) Odd spatial size, default (auto) planning, f32: single block per batch
    #    element with a padded final 128-lane row.
    logits4 = jax.random.normal(keys[6], (2, 5, 63, 63), dtype=jnp.float32)
    target4 = jax.random.randint(keys[7], (2, 63, 63), 0, 5, dtype=jnp.int32)
    loss4 = jax.block_until_ready(multiclass_dice_loss(logits4, target4))
    _check("f32_lane_pad", loss4, _reference_loss(logits4, target4), 2e-3)

    print("KERNEL_OK")
</pallas_src>

<mosaic_0001>
module attributes {stable_mosaic.version = 11 : i64} {
  func.func @_dice_stats_kernel(%arg0: i32, %arg1: i32, %arg2: i32, %arg3: memref<1x4x2x128xf32, #tpu.memory_space<vmem>>, %arg4: memref<1x1x2x128xi8, #tpu.memory_space<vmem>>, %arg5: memref<1x1x8x4xf32, #tpu.memory_space<vmem>>, %arg6: memref<8x4x128xf32, #tpu.memory_space<vmem>>) attributes {dimension_semantics = [#tpu.dimension_semantics<parallel>, #tpu.dimension_semantics<parallel>, #tpu.dimension_semantics<arbitrary>], iteration_bounds = array<i64: 1, 2, 1>, scalar_prefetch = 0 : i64, scratch_operands = 1 : i64, tpu.core_type = #tpu.core_type<tc>, window_params = [{transform_indices = @transform_0, window_bounds = array<i64: 1, 4, 2, 128>}, {transform_indices = @transform_1, window_bounds = array<i64: 1, 1, 2, 128>}, {transform_indices = @transform_2, window_bounds = array<i64: 1, 1, 8, 4>}]} {
    %c0_i32 = arith.constant 0 : i32
    %0 = arith.cmpi eq, %arg2, %c0_i32 : i32
    %1 = arith.extui %0 : i1 to i32
    %c0_i32_0 = arith.constant 0 : i32
    %2 = arith.cmpi ne, %1, %c0_i32_0 : i32
    scf.if %2 {
      %cst_121 = arith.constant 0.000000e+00 : f32
      %158 = vector.broadcast %cst_121 : f32 to vector<8x4x128xf32>
      %c0_122 = arith.constant 0 : index
      %c0_123 = arith.constant 0 : index
      %c0_124 = arith.constant 0 : index
      %159 = vector.load %arg6[%c0_122, %c0_123, %c0_124] : memref<8x4x128xf32, #tpu.memory_space<vmem>>, vector<8x4x128xf32>
      tpu.vector_store %arg6[%c0_122, %c0_123, %c0_124], %158 {strides = array<i32>} : memref<8x4x128xf32, #tpu.memory_space<vmem>>, vector<8x4x128xf32>,
    } else {
    }
    %c0 = arith.constant 0 : index
    %c0_1 = arith.constant 0 : index
    %c0_2 = arith.constant 0 : index
    %c0_3 = arith.constant 0 : index
    %3 = vector.load %arg4[%c0, %c0_1, %c0_2, %c0_3] : memref<1x1x2x128xi8, #tpu.memory_space<vmem>>, vector<1x1x2x128xi8>
    %4 = vector.shape_cast %3 : vector<1x1x2x128xi8> to vector<2x128xi8>
    %5 = arith.extsi %4 : vector<2x128xi8> to vector<2x128xi32>
    %cst = arith.constant 0.000000e+00 : f32
    %6 = vector.broadcast %cst : f32 to vector<2x128xf32>
    %c0_4 = arith.constant 0 : index
    %c0_5 = arith.constant 0 : index
    %c0_6 = arith.constant 0 : index
    %c0_7 = arith.constant 0 : index
    %7 = vector.load %arg3[%c0_4, %c0_5, %c0_6, %c0_7] : memref<1x4x2x128xf32, #tpu.memory_space<vmem>>, vector<1x1x2x128xf32>
    %8 = vector.shape_cast %7 : vector<1x1x2x128xf32> to vector<2x128xf32>
    %c0_8 = arith.constant 0 : index
    %c1 = arith.constant 1 : index
    %c0_9 = arith.constant 0 : index
    %c0_10 = arith.constant 0 : index
    %9 = vector.load %arg3[%c0_8, %c1, %c0_9, %c0_10] : memref<1x4x2x128xf32, #tpu.memory_space<vmem>>, vector<1x1x2x128xf32>
    %10 = vector.shape_cast %9 : vector<1x1x2x128xf32> to vector<2x128xf32>
    %11 = arith.maximumf %8, %10 : vector<2x128xf32>
    %c0_11 = arith.constant 0 : index
    %c2 = arith.constant 2 : index
    %c0_12 = arith.constant 0 : index
    %c0_13 = arith.constant 0 : index
    %12 = vector.load %arg3[%c0_11, %c2, %c0_12, %c0_13] : memref<1x4x2x128xf32, #tpu.memory_space<vmem>>, vector<1x1x2x128xf32>
    %13 = vector.shape_cast %12 : vector<1x1x2x128xf32> to vector<2x128xf32>
    %14 = arith.maximumf %11, %13 : vector<2x128xf32>
    %c0_14 = arith.constant 0 : index
    %c3 = arith.constant 3 : index
    %c0_15 = arith.constant 0 : index
    %c0_16 = arith.constant 0 : index
    %15 = vector.load %arg3[%c0_14, %c3, %c0_15, %c0_16] : memref<1x4x2x128xf32, #tpu.memory_space<vmem>>, vector<1x1x2x128xf32>
    %16 = vector.shape_cast %15 : vector<1x1x2x128xf32> to vector<2x128xf32>
    %17 = arith.maximumf %14, %16 : vector<2x128xf32>
    %c0_17 = arith.constant 0 : index
    %c0_18 = arith.constant 0 : index
    %c0_19 = arith.constant 0 : index
    %c0_20 = arith.constant 0 : index
    %18 = vector.load %arg3[%c0_17, %c0_18, %c0_19, %c0_20] : memref<1x4x2x128xf32, #tpu.memory_space<vmem>>, vector<1x1x2x128xf32>
    %19 = vector.shape_cast %18 : vector<1x1x2x128xf32> to vector<2x128xf32>
    %20 = arith.subf %19, %17 : vector<2x128xf32>
    %21 = math.exp %20 : vector<2x128xf32>
    %c0_21 = arith.constant 0 : index
    %c1_22 = arith.constant 1 : index
    %c0_23 = arith.constant 0 : index
    %c0_24 = arith.constant 0 : index
    %22 = vector.load %arg3[%c0_21, %c1_22, %c0_23, %c0_24] : memref<1x4x2x128xf32, #tpu.memory_space<vmem>>, vector<1x1x2x128xf32>
    %23 = vector.shape_cast %22 : vector<1x1x2x128xf32> to vector<2x128xf32>
    %24 = arith.subf %23, %17 : vector<2x128xf32>
    %25 = math.exp %24 : vector<2x128xf32>
    %26 = arith.addf %21, %25 : vector<2x128xf32>
    %c0_25 = arith.constant 0 : index
    %c2_26 = arith.constant 2 : index
    %c0_27 = arith.constant 0 : index
    %c0_28 = arith.constant 0 : index
    %27 = vector.load %arg3[%c0_25, %c2_26, %c0_27, %c0_28] : memref<1x4x2x128xf32, #tpu.memory_space<vmem>>, vector<1x1x2x128xf32>
    %28 = vector.shape_cast %27 : vector<1x1x2x128xf32> to vector<2x128xf32>
    %29 = arith.subf %28, %17 : vector<2x128xf32>
    %30 = math.exp %29 : vector<2x128xf32>
    %31 = arith.addf %26, %30 : vector<2x128xf32>
    %c0_29 = arith.constant 0 : index
    %c3_30 = arith.constant 3 : index
    %c0_31 = arith.constant 0 : index
    %c0_32 = arith.constant 0 : index
    %32 = vector.load %arg3[%c0_29, %c3_30, %c0_31, %c0_32] : memref<1x4x2x128xf32, #tpu.memory_space<vmem>>, vector<1x1x2x128xf32>
    %33 = vector.shape_cast %32 : vector<1x1x2x128xf32> to vector<2x128xf32>
    %34 = arith.subf %33, %17 : vector<2x128xf32>
    %35 = math.exp %34 : vector<2x128xf32>
    %36 = arith.addf %31, %35 : vector<2x128xf32>
    %37 = tpu.reciprocal %36 {approx = true} : vector<2x128xf32> -> vector<2x128xf32>
    %cst_33 = arith.constant 1.000000e+00 : f32
    %38 = vector.broadcast %cst_33 : f32 to vector<2x128xf32>
    %39 = arith.mulf %21, %37 : vector<2x128xf32>
    %c0_i32_34 = arith.constant 0 : i32
    %40 = vector.broadcast %c0_i32_34 : i32 to vector<2x128xi32>
    %41 = arith.cmpi eq, %5, %40 : vector<2x128xi32>
    %c0_35 = arith.constant 0 : index
    %c0_36 = arith.constant 0 : index
    %c0_37 = arith.constant 0 : index
    %42 = vector.load %arg6[%c0_35, %c0_36, %c0_37] : memref<8x4x128xf32, #tpu.memory_space<vmem>>, vector<1x1x128xf32>
    %43 = vector.shape_cast %42 : vector<1x1x128xf32> to vector<1x128xf32>
    %44 = arith.select %41, %39, %6 : vector<2x128xi1>, vector<2x128xf32>
    %cst_38 = arith.constant dense<0.000000e+00> : vector<128xf32>
    %45 = vector.multi_reduction <add>, %44, %cst_38 [0] : vector<2x128xf32> to vector<128xf32>
    %46 = vector.shape_cast %45 : vector<128xf32> to vector<1x128xf32>
    %47 = arith.addf %43, %46 : vector<1x128xf32>
    %c0_39 = arith.constant 0 : index
    %c0_40 = arith.constant 0 : index
    %c0_41 = arith.constant 0 : index
    %48 = vector.load %arg6[%c0_39, %c0_40, %c0_41] : memref<8x4x128xf32, #tpu.memory_space<vmem>>, vector<1x1x128xf32>
    %49 = vector.shape_cast %48 : vector<1x1x128xf32> to vector<1x128xf32>
    %50 = vector.shape_cast %47 : vector<1x128xf32> to vector<1x1x128xf32>
    tpu.vector_store %arg6[%c0_39, %c0_40, %c0_41], %50 {strides = array<i32>} : memref<8x4x128xf32, #tpu.memory_space<vmem>>, vector<1x1x128xf32>,
    %c1_42 = arith.constant 1 : index
    %c0_43 = arith.constant 0 : index
    %c0_44 = arith.constant 0 : index
    %51 = vector.load %arg6[%c1_42, %c0_43, %c0_44] : memref<8x4x128xf32, #tpu.memory_space<vmem>>, vector<1x1x128xf32>
    %52 = vector.shape_cast %51 : vector<1x1x128xf32> to vector<1x128xf32>
    %cst_45 = arith.constant dense<0.000000e+00> : vector<128xf32>
    %53 = vector.multi_reduction <add>, %39, %cst_45 [0] : vector<2x128xf32> to vector<128xf32>
    %54 = vector.shape_cast %53 : vector<128xf32> to vector<1x128xf32>
    %55 = arith.addf %52, %54 : vector<1x128xf32>
    %c1_46 = arith.constant 1 : index
    %c0_47 = arith.constant 0 : index
    %c0_48 = arith.constant 0 : index
    %56 = vector.load %arg6[%c1_46, %c0_47, %c0_48] : memref<8x4x128xf32, #tpu.memory_space<vmem>>, vector<1x1x128xf32>
    %57 = vector.shape_cast %56 : vector<1x1x128xf32> to vector<1x128xf32>
    %58 = vector.shape_cast %55 : vector<1x128xf32> to vector<1x1x128xf32>
    tpu.vector_store %arg6[%c1_46, %c0_47, %c0_48], %58 {strides = array<i32>} : memref<8x4x128xf32, #tpu.memory_space<vmem>>, vector<1x1x128xf32>,
    %c2_49 = arith.constant 2 : index
    %c0_50 = arith.constant 0 : index
    %c0_51 = arith.constant 0 : index
    %59 = vector.load %arg6[%c2_49, %c0_50, %c0_51] : memref<8x4x128xf32, #tpu.memory_space<vmem>>, vector<1x1x128xf32>
    %60 = vector.shape_cast %59 : vector<1x1x128xf32> to vector<1x128xf32>
    %61 = arith.select %41, %38, %6 : vector<2x128xi1>, vector<2x128xf32>
    %cst_52 = arith.constant dense<0.000000e+00> : vector<128xf32>
    %62 = vector.multi_reduction <add>, %61, %cst_52 [0] : vector<2x128xf32> to vector<128xf32>
    %63 = vector.shape_cast %62 : vector<128xf32> to vector<1x128xf32>
    %64 = arith.addf %60, %63 : vector<1x128xf32>
    %c2_53 = arith.constant 2 : index
    %c0_54 = arith.constant 0 : index
    %c0_55 = arith.constant 0 : index
    %65 = vector.load %arg6[%c2_53, %c0_54, %c0_55] : memref<8x4x128xf32, #tpu.memory_space<vmem>>, vector<1x1x128xf32>
    %66 = vector.shape_cast %65 : vector<1x1x128xf32> to vector<1x128xf32>
    %67 = vector.shape_cast %64 : vector<1x128xf32> to vector<1x1x128xf32>
    tpu.vector_store %arg6[%c2_53, %c0_54, %c0_55], %67 {strides = array<i32>} : memref<8x4x128xf32, #tpu.memory_space<vmem>>, vector<1x1x128xf32>,
    %68 = arith.mulf %25, %37 : vector<2x128xf32>
    %c1_i32 = arith.constant 1 : i32
    %69 = vector.broadcast %c1_i32 : i32 to vector<2x128xi32>
    %70 = arith.cmpi eq, %5, %69 : vector<2x128xi32>
    %c0_56 = arith.constant 0 : index
    %c1_57 = arith.constant 1 : index
    %c0_58 = arith.constant 0 : index
    %71 = vector.load %arg6[%c0_56, %c1_57, %c0_58] : memref<8x4x128xf32, #tpu.memory_space<vmem>>, vector<1x1x128xf32>
    %72 = vector.shape_cast %71 : vector<1x1x128xf32> to vector<1x128xf32>
    %73 = arith.select %70, %68, %6 : vector<2x128xi1>, vector<2x128xf32>
    %cst_59 = arith.constant dense<0.000000e+00> : vector<128xf32>
    %74 = vector.multi_reduction <add>, %73, %cst_59 [0] : vector<2x128xf32> to vector<128xf32>
    %75 = vector.shape_cast %74 : vector<128xf32> to vector<1x128xf32>
    %76 = arith.addf %72, %75 : vector<1x128xf32>
    %c0_60 = arith.constant 0 : index
    %c1_61 = arith.constant 1 : index
    %c0_62 = arith.constant 0 : index
    %77 = vector.load %arg6[%c0_60, %c1_61, %c0_62] : memref<8x4x128xf32, #tpu.memory_space<vmem>>, vector<1x1x128xf32>
    %78 = vector.shape_cast %77 : vector<1x1x128xf32> to vector<1x128xf32>
    %79 = vector.shape_cast %76 : vector<1x128xf32> to vector<1x1x128xf32>
    tpu.vector_store %arg6[%c0_60, %c1_61, %c0_62], %79 {strides = array<i32>} : memref<8x4x128xf32, #tpu.memory_space<vmem>>, vector<1x1x128xf32>,
    %c1_63 = arith.constant 1 : index
    %c1_64 = arith.constant 1 : index
    %c0_65 = arith.constant 0 : index
    %80 = vector.load %arg6[%c1_63, %c1_64, %c0_65] : memref<8x4x128xf32, #tpu.memory_space<vmem>>, vector<1x1x128xf32>
    %81 = vector.shape_cast %80 : vector<1x1x128xf32> to vector<1x128xf32>
    %cst_66 = arith.constant dense<0.000000e+00> : vector<128xf32>
    %82 = vector.multi_reduction <add>, %68, %cst_66 [0] : vector<2x128xf32> to vector<128xf32>
    %83 = vector.shape_cast %82 : vector<128xf32> to vector<1x128xf32>
    %84 = arith.addf %81, %83 : vector<1x128xf32>
    %c1_67 = arith.constant 1 : index
    %c1_68 = arith.constant 1 : index
    %c0_69 = arith.constant 0 : index
    %85 = vector.load %arg6[%c1_67, %c1_68, %c0_69] : memref<8x4x128xf32, #tpu.memory_space<vmem>>, vector<1x1x128xf32>
    %86 = vector.shape_cast %85 : vector<1x1x128xf32> to vector<1x128xf32>
    %87 = vector.shape_cast %84 : vector<1x128xf32> to vector<1x1x128xf32>
    tpu.vector_store %arg6[%c1_67, %c1_68, %c0_69], %87 {strides = array<i32>} : memref<8x4x128xf32, #tpu.memory_space<vmem>>, vector<1x1x128xf32>,
    %c2_70 = arith.constant 2 : index
    %c1_71 = arith.constant 1 : index
    %c0_72 = arith.constant 0 : index
    %88 = vector.load %arg6[%c2_70, %c1_71, %c0_72] : memref<8x4x128xf32, #tpu.memory_space<vmem>>, vector<1x1x128xf32>
    %89 = vector.shape_cast %88 : vector<1x1x128xf32> to vector<1x128xf32>
    %90 = arith.select %70, %38, %6 : vector<2x128xi1>, vector<2x128xf32>
    %cst_73 = arith.constant dense<0.000000e+00> : vector<128xf32>
    %91 = vector.multi_reduction <add>, %90, %cst_73 [0] : vector<2x128xf32> to vector<128xf32>
    %92 = vector.shape_cast %91 : vector<128xf32> to vector<1x128xf32>
    %93 = arith.addf %89, %92 : vector<1x128xf32>
    %c2_74 = arith.constant 2 : index
    %c1_75 = arith.constant 1 : index
    %c0_76 = arith.constant 0 : index
    %94 = vector.load %arg6[%c2_74, %c1_75, %c0_76] : memref<8x4x128xf32, #tpu.memory_space<vmem>>, vector<1x1x128xf32>
    %95 = vector.shape_cast %94 : vector<1x1x128xf32> to vector<1x128xf32>
    %96 = vector.shape_cast %93 : vector<1x128xf32> to vector<1x1x128xf32>
    tpu.vector_store %arg6[%c2_74, %c1_75, %c0_76], %96 {strides = array<i32>} : memref<8x4x128xf32, #tpu.memory_space<vmem>>, vector<1x1x128xf32>,
    %97 = arith.mulf %30, %37 : vector<2x128xf32>
    %c2_i32 = arith.constant 2 : i32
    %98 = vector.broadcast %c2_i32 : i32 to vector<2x128xi32>
    %99 = arith.cmpi eq, %5, %98 : vector<2x128xi32>
    %c0_77 = arith.constant 0 : index
    %c2_78 = arith.constant 2 : index
    %c0_79 = arith.constant 0 : index
    %100 = vector.load %arg6[%c0_77, %c2_78, %c0_79] : memref<8x4x128xf32, #tpu.memory_space<vmem>>, vector<1x1x128xf32>
    %101 = vector.shape_cast %100 : vector<1x1x128xf32> to vector<1x128xf32>
    %102 = arith.select %99, %97, %6 : vector<2x128xi1>, vector<2x128xf32>
    %cst_80 = arith.constant dense<0.000000e+00> : vector<128xf32>
    %103 = vector.multi_reduction <add>, %102, %cst_80 [0] : vector<2x128xf32> to vector<128xf32>
    %104 = vector.shape_cast %103 : vector<128xf32> to vector<1x128xf32>
    %105 = arith.addf %101, %104 : vector<1x128xf32>
    %c0_81 = arith.constant 0 : index
    %c2_82 = arith.constant 2 : index
    %c0_83 = arith.constant 0 : index
    %106 = vector.load %arg6[%c0_81, %c2_82, %c0_83] : memref<8x4x128xf32, #tpu.memory_space<vmem>>, vector<1x1x128xf32>
    %107 = vector.shape_cast %106 : vector<1x1x128xf32> to vector<1x128xf32>
    %108 = vector.shape_cast %105 : vector<1x128xf32> to vector<1x1x128xf32>
    tpu.vector_store %arg6[%c0_81, %c2_82, %c0_83], %108 {strides = array<i32>} : memref<8x4x128xf32, #tpu.memory_space<vmem>>, vector<1x1x128xf32>,
    %c1_84 = arith.constant 1 : index
    %c2_85 = arith.constant 2 : index
    %c0_86 = arith.constant 0 : index
    %109 = vector.load %arg6[%c1_84, %c2_85, %c0_86] : memref<8x4x128xf32, #tpu.memory_space<vmem>>, vector<1x1x128xf32>
    %110 = vector.shape_cast %109 : vector<1x1x128xf32> to vector<1x128xf32>
    %cst_87 = arith.constant dense<0.000000e+00> : vector<128xf32>
    %111 = vector.multi_reduction <add>, %97, %cst_87 [0] : vector<2x128xf32> to vector<128xf32>
    %112 = vector.shape_cast %111 : vector<128xf32> to vector<1x128xf32>
    %113 = arith.addf %110, %112 : vector<1x128xf32>
    %c1_88 = arith.constant 1 : index
    %c2_89 = arith.constant 2 : index
    %c0_90 = arith.constant 0 : index
    %114 = vector.load %arg6[%c1_88, %c2_89, %c0_90] : memref<8x4x128xf32, #tpu.memory_space<vmem>>, vector<1x1x128xf32>
    %115 = vector.shape_cast %114 : vector<1x1x128xf32> to vector<1x128xf32>
    %116 = vector.shape_cast %113 : vector<1x128xf32> to vector<1x1x128xf32>
    tpu.vector_store %arg6[%c1_88, %c2_89, %c0_90], %116 {strides = array<i32>} : memref<8x4x128xf32, #tpu.memory_space<vmem>>, vector<1x1x128xf32>,
    %c2_91 = arith.constant 2 : index
    %c2_92 = arith.constant 2 : index
    %c0_93 = arith.constant 0 : index
    %117 = vector.load %arg6[%c2_91, %c2_92, %c0_93] : memref<8x4x128xf32, #tpu.memory_space<vmem>>, vector<1x1x128xf32>
    %118 = vector.shape_cast %117 : vector<1x1x128xf32> to vector<1x128xf32>
    %119 = arith.select %99, %38, %6 : vector<2x128xi1>, vector<2x128xf32>
    %cst_94 = arith.constant dense<0.000000e+00> : vector<128xf32>
    %120 = vector.multi_reduction <add>, %119, %cst_94 [0] : vector<2x128xf32> to vector<128xf32>
    %121 = vector.shape_cast %120 : vector<128xf32> to vector<1x128xf32>
    %122 = arith.addf %118, %121 : vector<1x128xf32>
    %c2_95 = arith.constant 2 : index
    %c2_96 = arith.constant 2 : index
    %c0_97 = arith.constant 0 : index
    %123 = vector.load %arg6[%c2_95, %c2_96, %c0_97] : memref<8x4x128xf32, #tpu.memory_space<vmem>>, vector<1x1x128xf32>
    %124 = vector.shape_cast %123 : vector<1x1x128xf32> to vector<1x128xf32>
    %125 = vector.shape_cast %122 : vector<1x128xf32> to vector<1x1x128xf32>
    tpu.vector_store %arg6[%c2_95, %c2_96, %c0_97], %125 {strides = array<i32>} : memref<8x4x128xf32, #tpu.memory_space<vmem>>, vector<1x1x128xf32>,
    %126 = arith.mulf %35, %37 : vector<2x128xf32>
    %c3_i32 = arith.constant 3 : i32
    %127 = vector.broadcast %c3_i32 : i32 to vector<2x128xi32>
    %128 = arith.cmpi eq, %5, %127 : vector<2x128xi32>
    %c0_98 = arith.constant 0 : index
    %c3_99 = arith.constant 3 : index
    %c0_100 = arith.constant 0 : index
    %129 = vector.load %arg6[%c0_98, %c3_99, %c0_100] : memref<8x4x128xf32, #tpu.memory_space<vmem>>, vector<1x1x128xf32>
    %130 = vector.shape_cast %129 : vector<1x1x128xf32> to vector<1x128xf32>
    %131 = arith.select %128, %126, %6 : vector<2x128xi1>, vector<2x128xf32>
    %cst_101 = arith.constant dense<0.000000e+00> : vector<128xf32>
    %132 = vector.multi_reduction <add>, %131, %cst_101 [0] : vector<2x128xf32> to vector<128xf32>
    %133 = vector.shape_cast %132 : vector<128xf32> to vector<1x128xf32>
    %134 = arith.addf %130, %133 : vector<1x128xf32>
    %c0_102 = arith.constant 0 : index
    %c3_103 = arith.constant 3 : index
    %c0_104 = arith.constant 0 : index
    %135 = vector.load %arg6[%c0_102, %c3_103, %c0_104] : memref<8x4x128xf32, #tpu.memory_space<vmem>>, vector<1x1x128xf32>
    %136 = vector.shape_cast %135 : vector<1x1x128xf32> to vector<1x128xf32>
    %137 = vector.shape_cast %134 : vector<1x128xf32> to vector<1x1x128xf32>
    tpu.vector_store %arg6[%c0_102, %c3_103, %c0_104], %137 {strides = array<i32>} : memref<8x4x128xf32, #tpu.memory_space<vmem>>, vector<1x1x128xf32>,
    %c1_105 = arith.constant 1 : index
    %c3_106 = arith.constant 3 : index
    %c0_107 = arith.constant 0 : index
    %138 = vector.load %arg6[%c1_105, %c3_106, %c0_107] : memref<8x4x128xf32, #tpu.memory_space<vmem>>, vector<1x1x128xf32>
    %139 = vector.shape_cast %138 : vector<1x1x128xf32> to vector<1x128xf32>
    %cst_108 = arith.constant dense<0.000000e+00> : vector<128xf32>
    %140 = vector.multi_reduction <add>, %126, %cst_108 [0] : vector<2x128xf32> to vector<128xf32>
    %141 = vector.shape_cast %140 : vector<128xf32> to vector<1x128xf32>
    %142 = arith.addf %139, %141 : vector<1x128xf32>
    %c1_109 = arith.constant 1 : index
    %c3_110 = arith.constant 3 : index
    %c0_111 = arith.constant 0 : index
    %143 = vector.load %arg6[%c1_109, %c3_110, %c0_111] : memref<8x4x128xf32, #tpu.memory_space<vmem>>, vector<1x1x128xf32>
    %144 = vector.shape_cast %143 : vector<1x1x128xf32> to vector<1x128xf32>
    %145 = vector.shape_cast %142 : vector<1x128xf32> to vector<1x1x128xf32>
    tpu.vector_store %arg6[%c1_109, %c3_110, %c0_111], %145 {strides = array<i32>} : memref<8x4x128xf32, #tpu.memory_space<vmem>>, vector<1x1x128xf32>,
    %c2_112 = arith.constant 2 : index
    %c3_113 = arith.constant 3 : index
    %c0_114 = arith.constant 0 : index
    %146 = vector.load %arg6[%c2_112, %c3_113, %c0_114] : memref<8x4x128xf32, #tpu.memory_space<vmem>>, vector<1x1x128xf32>
    %147 = vector.shape_cast %146 : vector<1x1x128xf32> to vector<1x128xf32>
    %148 = arith.select %128, %38, %6 : vector<2x128xi1>, vector<2x128xf32>
    %cst_115 = arith.constant dense<0.000000e+00> : vector<128xf32>
    %149 = vector.multi_reduction <add>, %148, %cst_115 [0] : vector<2x128xf32> to vector<128xf32>
    %150 = vector.shape_cast %149 : vector<128xf32> to vector<1x128xf32>
    %151 = arith.addf %147, %150 : vector<1x128xf32>
    %c2_116 = arith.constant 2 : index
    %c3_117 = arith.constant 3 : index
    %c0_118 = arith.constant 0 : index
    %152 = vector.load %arg6[%c2_116, %c3_117, %c0_118] : memref<8x4x128xf32, #tpu.memory_space<vmem>>, vector<1x1x128xf32>
    %153 = vector.shape_cast %152 : vector<1x1x128xf32> to vector<1x128xf32>
    %154 = vector.shape_cast %151 : vector<1x128xf32> to vector<1x1x128xf32>
    tpu.vector_store %arg6[%c2_116, %c3_117, %c0_118], %154 {strides = array<i32>} : memref<8x4x128xf32, #tpu.memory_space<vmem>>, vector<1x1x128xf32>,
    %c0_i32_119 = arith.constant 0 : i32
    %155 = arith.cmpi eq, %arg2, %c0_i32_119 : i32
    %156 = arith.extui %155 : i1 to i32
    %c0_i32_120 = arith.constant 0 : i32
    %157 = arith.cmpi ne, %156, %c0_i32_120 : i32
    scf.if %157 {
      %c0_121 = arith.constant 0 : index
      %c0_122 = arith.constant 0 : index
      %c0_123 = arith.constant 0 : index
      %158 = vector.load %arg6[%c0_121, %c0_122, %c0_123] : memref<8x4x128xf32, #tpu.memory_space<vmem>>, vector<8x4x128xf32>
      %cst_124 = arith.constant dense<0.000000e+00> : vector<8x4xf32>
      %159 = vector.multi_reduction <add>, %158, %cst_124 [2] : vector<8x4x128xf32> to vector<8x4xf32>
      %c0_125 = arith.constant 0 : index
      %c0_126 = arith.constant 0 : index
      %c0_127 = arith.constant 0 : index
      %c0_128 = arith.constant 0 : index
      %160 = vector.load %arg5[%c0_125, %c0_126, %c0_127, %c0_128] : memref<1x1x8x4xf32, #tpu.memory_space<vmem>>, vector<1x1x8x4xf32>
      %161 = vector.shape_cast %160 : vector<1x1x8x4xf32> to vector<8x4xf32>
      %162 = vector.shape_cast %159 : vector<8x4xf32> to vector<1x1x8x4xf32>
      tpu.vector_store %arg5[%c0_125, %c0_126, %c0_127, %c0_128], %162 {strides = array<i32>} : memref<1x1x8x4xf32, #tpu.memory_space<vmem>>, vector<1x1x8x4xf32>,
    } else {
    }
    return
  }
  func.func @transform_0(%arg0: i32, %arg1: i32, %arg2: i32) -> (i32, i32, i32, i32) {
    %c1_i32 = arith.constant 1 : i32
    %0 = arith.muli %arg0, %c1_i32 : i32
    %1 = arith.addi %0, %arg2 : i32
    %c0_i32 = arith.constant 0 : i32
    %c0_i32_0 = arith.constant 0 : i32
    %c0_i32_1 = arith.constant 0 : i32
    return %arg1, %c0_i32, %1, %c0_i32_0 : i32, i32, i32, i32
  }
  func.func @transform_1(%arg0: i32, %arg1: i32, %arg2: i32) -> (i32, i32, i32, i32) {
    %c1_i32 = arith.constant 1 : i32
    %0 = arith.muli %arg0, %c1_i32 : i32
    %1 = arith.addi %0, %arg2 : i32
    %c0_i32 = arith.constant 0 : i32
    %c0_i32_0 = arith.constant 0 : i32
    %c0_i32_1 = arith.constant 0 : i32
    return %arg1, %c0_i32, %1, %c0_i32_0 : i32, i32, i32, i32
  }
  func.func @transform_2(%arg0: i32, %arg1: i32, %arg2: i32) -> (i32, i32, i32, i32) {
    %c0_i32 = arith.constant 0 : i32
    %c0_i32_0 = arith.constant 0 : i32
    %c0_i32_1 = arith.constant 0 : i32
    return %arg0, %arg1, %c0_i32, %c0_i32_0 : i32, i32, i32, i32
  }
}

</mosaic_0001>

<bundles_post_ra>
// kernel: tpu_custom_call.1
= control target key start
LH: loop header
LB: loop body
LE: loop exit
PB: predicated region body
PF: predicated region fallthrough
CT: control target
= control target key end

     0   :  { %7 = vsyncpa [#allocation4], 0  ;;  %s969_s0 = inlined_call_operand.hbm [shape: f32[2,4,2,128], index: 0, kind: input, shape index: {}]   ;;  %s970_s1 = inlined_call_operand.vmem [shape: s8[2,1,2,128], index: 1, kind: input, shape index: {}]   ;;  %s971_s2 = inlined_call_operand.vmem [shape: f32[1,2,8,4], index: 2, kind: output, shape index: {}]  }
   0x1   :  { %9 = vsyncpa [#allocation4 + $0x1], 0  ;;  %s796_s9 = smov 0   ;;  %s798_s10 = smov 0  }
   0x2   :  { %s800_s11 = smov 0   ;;  %s802_s12 = smov 0  }
   0x3   :  { %s804_s13 = smov 0   ;;  %s806_s14 = smov 0  }
   0x4 LB: > { %s611_s15 = sadd.s32 4294967295, %s775_s14   ;;  %s30_s16 = sadd.s32 1, %s771_s13  ;;  %s775_s14 = sphi %s806_s14, %s15_s14   ;;  %s771_s13 = sphi %s804_s13, %s979_s13   ;;  %s767_s12 = sphi %s802_s12, %s978_s12   ;;  %s763_s11 = sphi %s800_s11, %s977_s11   ;;  %s759_s10 = sphi %s798_s10, %s976_s10   ;;  %s755_s9 = sphi %s796_s9, %s975_s9  }
   0x5   : > { %p32_p0 = scmp.ge.s32.totalorder %s30_s16, 2  ;;  %s45_s17 = sadd.s32 1, %s763_s11 }
   0x6   : > { %p52_p1 = scmp.ne.s32.totalorder %s763_s11, %s759_s10  ;;  %p53_p2 = scmp.eq.s32.totalorder %s775_s14, 0 }
   0x7   : > { %s981_s16 = smov (%p32_p0, %s30_s16), 0  ;;  %p58_p4 = scmp.ne.s32.totalorder %s759_s10, %s755_s9 }
   0x8   : > { %p832_p3 = por %p53_p2, %p52_p1  ;;  %s40_s19 = ssub.s32 %s771_s13, %s981_s16 }
   0x9   : > { %p59_p5 = scmp.eq.s32.totalorder %s611_s15, 0  ;;  %p43_p6 = scmp.eq.s32.totalorder %s40_s19, 0 }
   0xa   : > { %p633_p8 = scmp.lt.s32.totalorder %s775_s14, 2  ;;  %s140_s22 = sand.u32 1, %s763_s11  }
   0xb   : > { %p839_p7 = por %p59_p5, %p58_p4  ;;  %s626_s23 = sshll.u32 %s771_s13, 7 }
   0xc   : > { %s845_s21 = scalar_select %p43_p6, %s763_s11, %s45_s17  }
   0xd   : > { %s615_s24 = sshll.u32 %s140_s22, 3  ;;  %s852_s27 = scalar_lea.hbm %s969_s0, %s626_s23 }
   0xe   : > { %s144_s28 = scalar_lea.vmem [#allocation3], %s615_s24  ;;  %p856_p9 = pnand %p633_p8, %p832_p3 }
   0xf   : > { %s153_s29 = sshll.u32 %s144_s28, 4  ;;  %s862_s3 = scalar_lea.sflag [#allocation4], %s140_s22  ;;  %s860_s29 = int_to_ptr.vmem [resolvable:$true] %s153_s29 }
  0x10   : > { %s695_s4 = scalar_lea.hbm %s852_s27, 128  ;;  %p697_p11 = pneg %p856_p9 }
  0x11   : > { %p696_p10 = scmp.ne.s32.totalorder %s852_s27, %s695_s4  ;;  %s700_s7 = scalar_lea.hbm %s969_s0, 256 }
  0x12   : > { %p701_p0 = scmp.lt.u32.totalorder %s852_s27, %s969_s0  ;;  %p702_p1 = scmp.lt.u32.totalorder %s700_s7, %s695_s4 }
  0x13   : > { %p698_p12 = pnand %p697_p11, %p696_p10  ;;  %p704_p3 = scmp.lt.u32.totalorder %s695_s4, %s852_s27 }
  0x14   : > { %p703_p2 = por %p702_p1, %p701_p0 }
  0x15   : > { %p699_p13 = pneg %p698_p12 }
  0x16   : > { %p705_p4 = por %p704_p3, %p703_p2 }
  0x18   : > { %p706_p5 = pnand %p705_p4, %p699_p13 }
  0x1a   : > { %709 = shalt.err (!%p706_p5)
}
  0x1b   : > { %s710_s15 = scalar_lea.vmem %s860_s29, 128  ;;  %s777_s17 = smov [#allocation3]  }
  0x1c   : > { %p711_p6 = scmp.ne.s32.totalorder %s860_s29, %s710_s15  ;;  %s715_s18 = sshll.u32 %s777_s17, 4  ;;  %s716_s18 = int_to_ptr.vmem [resolvable:$false] %s715_s18 }
  0x1d   : > { %s717_s19 = scalar_lea.vmem %s716_s18, 256  ;;  %p718_p12 = scmp.lt.s32.totalorder %s860_s29, %s716_s18 }
  0x1e   : > { %p713_p8 = pnand %p711_p6, %p697_p11  ;;  %p719_p0 = scmp.lt.s32.totalorder %s717_s19, %s710_s15 }
  0x20   : > { %p714_p10 = pneg %p713_p8  ;;  %p720_p1 = por %p719_p0, %p718_p12 }
  0x22   : > { %p721_p2 = pnand %p720_p1, %p714_p10 }
  0x24   : > { %724 = shalt.err (!%p721_p2)
}
  0x25   : > { %s778_s22 = smov 32   ;;  %s779_s23 = smov 2  }
  0x26   : > { %632 = dma.hbm_to_vmem [thread:$0]  (!%p856_p9), %s852_s27, 128, %s860_s29, %s862_s3, %s778_s22, %s778_s22, %s779_s23  }
  0x27   : > { %p618_p11 = scmp.ge.s32.totalorder %s775_s14, 1  ;;  %p172_p13 = scmp.lt.s32.totalorder %s775_s14, 3 }
  0x29   : > { %p173_p3 = pnand %p618_p11, %p172_p13 }
  0x2a   : > { %s178_s24 = sand.u32 (!%p173_p3), 1, %s759_s10  }
  0x2b   : > { %176 = sbr.rel (%p173_p3) target bundleno = 280 (0x118), region = 28  ;;  %s619_s25 = sshll.u32 (!%p173_p3), %s178_s24, 3 }
  0x2c   : > { %s179_s26 = scalar_lea.sflag (!%p173_p3), [#allocation4], %s178_s24  ;;  %s182_s28 = scalar_lea.vmem (!%p173_p3), [#allocation3], %s619_s25 }
  0x32   : > { %750 = dma.done.wait (%p839_p7), %s179_s26, 128  }
  0x33   : > { %752 = vsyncadd (%p839_p7), %s179_s26, 4294967168  ;;  %p215_p4 = scmp.lt.s32.totalorder %s767_s12, 1  ;;  %v780_v0 = vmov 0.0   ;;  %vm420_vm0 = vcmask 1043456   ;;  %v244_v1 = vld [vmem:[%s182_s28] sm:$0x3] }
  0x34   : > { %235 = vst [vmem:[#allocation2 + $0x4] sm:$0xf] %v780_v0  ;;  %234 = vst [vmem:[#allocation2] sm:$0xf] %v780_v0  ;;  %v621_v2 = vld [vmem:[%s182_s28 + $0x2] sm:$0x3] }
  0x35   : > { %236 = vst [vmem:[#allocation2 + $0x8] sm:$0xf] %v780_v0  ;;  %237 = vst [vmem:[#allocation2 + $0xc] sm:$0xf] %v780_v0  ;;  %s983_s12 = smov (!%p215_p4, %s767_s12), 1  ;;  %v247_v4 = vmax.f32 %v244_v1, %v621_v2  ;;  %vm274_vm1 = vcmask 1041408  }
  0x36   : > { %238 = vst [vmem:[#allocation2 + $0x10] sm:$0xf] %v780_v0  ;;  %239 = vst [vmem:[#allocation2 + $0x14] sm:$0xf] %v780_v0  ;;  %v622_v3 = vld [vmem:[%s182_s28 + $0x4] sm:$0x3]  ;;  %s220_s29 = scalar_lea.vmem %s970_s1, %s983_s12 }
  0x37   : > { %240 = vst [vmem:[#allocation2 + $0x18] sm:$0xf] %v780_v0  ;;  %241 = vst [vmem:[#allocation2 + $0x1c] sm:$0xf] %v780_v0  ;;  %v623_v5 = vld [vmem:[%s182_s28 + $0x6] sm:$0x3]  ;;  %v250_v7 = vmax.f32 %v247_v4, %v622_v3 }
  0x38   : > { %v242_v9 = vld [vmem:[%s220_s29] sm:$0x1]  ;;  %vm487_vm6 = vcmask 1041409   ;;  %vm489_vm7 = vcmask 1042434   ;;  %vm491_vm8 = vcmask 1043459   ;;  %vm493_vm9 = vcmask 1044484  }
  0x39   : > { %v906_v10 = vunpack.c.0.s8 %v242_v9  ;;  %v253_v11 = vmax.f32 %v250_v7, %v623_v5  ;;  %vm495_vm10 = vcmask 1045509   ;;  %s620_s30 = sshll.u32 %s983_s12, 3  ;;  %vm497_vm11 = vcmask 1046534  }
  0x3a   : > { %vm499_vm12 = vcmask 1047559   ;;  %s229_s5 = scalar_lea.vmem %s971_s2, %s620_s30  ;;  %vm502_vm13 = vcmask 31744  }
  0x3b   : > { %vm271_vm2 = vcmp.eq.s32.totalorder %v906_v10, 0  ;;  %vm308_vm3 = vcmp.eq.s32.totalorder %v906_v10, 1  ;;  %vm342_vm4 = vcmp.eq.s32.totalorder %v906_v10, 2  ;;  %vm376_vm5 = vcmp.eq.s32.totalorder %v906_v10, 3 }
  0x3c   : > { %v415_v6 = vld [vmem:[#allocation2 + $0xc] sm:$0xf]  ;;  %v254_v12 = vsub.f32 %v244_v1, %v253_v11  ;;  %v257_v13 = vsub.f32 %v621_v2, %v253_v11  ;;  %v261_v14 = vsub.f32 %v622_v3, %v253_v11  ;;  %v265_v15 = vsub.f32 %v623_v5, %v253_v11  ;;  %v296_v46 = vld [vmem:[#allocation2 + $0x8] sm:$0x1]  ;;  %v330_v47 = vld [vmem:[#allocation2 + $0x9] sm:$0x1] }
  0x3d   : > { %v430_v8 = vsel %vm420_vm0, %v415_v6, 0.0  ;;  %v297_v16 = vsel %vm271_vm2, 1.0, %v780_v0  ;;  %v331_v17 = vsel %vm308_vm3, 1.0, %v780_v0  ;;  %v365_v18 = vsel %vm342_vm4, 1.0, %v780_v0  ;;  %v364_v48 = vld [vmem:[#allocation2 + $0xa] sm:$0x1] }
  0x3e   : > { %431 = vadd.xlane.f32.xlu1 %v430_v8  ;;  %v399_v19 = vsel %vm376_vm5, 1.0, %v780_v0  ;;  %v255_v20 = vmul.f32 1.442695, %v254_v12  ;;  %v258_v21 = vmul.f32 1.442695, %v257_v13  ;;  %v298_v24 = vsel %vm274_vm1, %v297_v16, 0.0 }
  0x3f   : > { %v262_v22 = vmul.f32 1.442695, %v261_v14  ;;  %v266_v23 = vmul.f32 1.442695, %v265_v15  ;;  %v332_v25 = vsel %vm274_vm1, %v331_v17, 0.0  ;;  %v366_v26 = vsel %vm274_vm1, %v365_v18, 0.0 }
  0x40   : > { %685 = vpow2.f32 %v255_v20  ;;  %v299_v27 = vrot.slane %v298_v24, 4  ;;  %v333_v28 = vrot.slane %v332_v25, 4  ;;  %v367_v29 = vrot.slane %v366_v26, 4  ;;  %v398_v61 = vld [vmem:[#allocation2 + $0xb] sm:$0x1] }
  0x41   : > { %687 = vpow2.f32 %v258_v21  ;;  %v400_v30 = vsel %vm274_vm1, %v399_v19, 0.0  ;;  %v417_v4 = vld [vmem:[#allocation2 + $0x14] sm:$0xf]  ;;  %v419_v7 = vld [vmem:[#allocation2 + $0x1c] sm:$0xf] }
  0x42   : > { %689 = vpow2.f32 %v262_v22  ;;  %v300_v31 = vadd.f32 %v299_v27, %v298_v24  ;;  %v334_v32 = vadd.f32 %v333_v28, %v332_v25  ;;  %v368_v33 = vadd.f32 %v367_v29, %v366_v26 }
  0x43   : > { %691 = vpow2.f32 %v266_v23  ;;  %v401_v34 = vrot.slane %v400_v30, 4  ;;  %v436_v6 = vsel %vm420_vm0, %v417_v4, 0.0  ;;  %v442_v14 = vsel %vm420_vm0, %v419_v7, 0.0 }
  0x44   : > { %v301_v35 = vrot.slane %v300_v31, 2  ;;  %v335_v36 = vrot.slane %v334_v32, 2  ;;  %v369_v37 = vrot.slane %v368_v33, 2 }
  0x45   : > { %v402_v38 = vadd.f32 %v401_v34, %v400_v30 }
  0x46   : > { %v302_v39 = vadd.f32 %v301_v35, %v300_v31  ;;  %v336_v40 = vadd.f32 %v335_v36, %v334_v32  ;;  %v370_v41 = vadd.f32 %v369_v37, %v368_v33 }
  0x47   : > { %v403_v42 = vrot.slane %v402_v38, 2 }
  0x48   : > { %v303_v43 = vrot.slane %v302_v39, 1  ;;  %v337_v44 = vrot.slane %v336_v40, 1  ;;  %v371_v45 = vrot.slane %v370_v41, 1 }
  0x49   : > { %v404_v49 = vadd.f32 %v403_v42, %v402_v38 }
  0x4a   : > { %v686_v50 = vpop.eup %685  ;;  %v304_v51 = vadd.f32 %v303_v43, %v302_v39  ;;  %v338_v52 = vadd.f32 %v337_v44, %v336_v40  ;;  %v372_v53 = vadd.f32 %v371_v45, %v370_v41 }
  0x4b   : > { %v688_v54 = vpop.eup %687  ;;  %v405_v55 = vrot.slane %v404_v49, 1 }
  0x4c   : > { %v690_v56 = vpop.eup %689  ;;  %v260_v57 = vadd.f32 %v688_v54, %v686_v50  ;;  %v305_v58 = vadd.f32 %v304_v51, %v296_v46  ;;  %v339_v59 = vadd.f32 %v338_v52, %v330_v47  ;;  %v373_v60 = vadd.f32 %v372_v53, %v364_v48  ;;  %v285_v46 = vld [vmem:[#allocation2 + $0x4] sm:$0x1]  ;;  %v320_v47 = vld [vmem:[#allocation2 + $0x5] sm:$0x1] }
  0x4d   : > { %v692_v62 = vpop.eup %691  ;;  %v406_v63 = vadd.f32 %v405_v55, %v404_v49 }
  0x4e   : > { %v264_v0 = vadd.f32 %v690_v56, %v260_v57  ;;  %306 = vst [vmem:[#allocation2 + $0x8] sm:$0x1] %v305_v58  ;;  %340 = vst [vmem:[#allocation2 + $0x9] sm:$0x1] %v339_v59  ;;  %v388_v57 = vld [vmem:[#allocation2 + $0x7] sm:$0x1] }
  0x4f   : > { %374 = vst [vmem:[#allocation2 + $0xa] sm:$0x1] %v373_v60  ;;  %v407_v1 = vadd.f32 %v406_v63, %v398_v61 }
  0x50   : > { %v268_v2 = vadd.f32 %v692_v62, %v264_v0 }
  0x51   : > { %408 = vst [vmem:[#allocation2 + $0xb] sm:$0x1] %v407_v1 }
  0x52   : > { %693 = vrcp.f32 %v268_v2 }
  0x58   : > { %v414_v3 = vld [vmem:[#allocation2 + $0x8] sm:$0xf] }
  0x59   : > { %v427_v5 = vsel %vm420_vm0, %v414_v3, 0.0 }
  0x5a   : > { %428 = vadd.xlane.f32.xlu1 %v427_v5 }
  0x5c   : > { %v694_v8 = vpop.eup %693 }
  0x5d   : > { %v270_v9 = vmul.f32 %v694_v8, %v686_v50  ;;  %v307_v11 = vmul.f32 %v694_v8, %v688_v54  ;;  %v341_v12 = vmul.f32 %v694_v8, %v690_v56  ;;  %v375_v13 = vmul.f32 %v694_v8, %v692_v62  ;;  %v354_v54 = vld [vmem:[#allocation2 + $0x6] sm:$0x1] }
  0x5e   : > { %437 = vadd.xlane.f32.xlu1 %v436_v6 }
  0x5f   : > { %v286_v15 = vsel %vm274_vm1, %v270_v9, 0.0  ;;  %v321_v16 = vsel %vm274_vm1, %v307_v11, 0.0  ;;  %v355_v17 = vsel %vm274_vm1, %v341_v12, 0.0  ;;  %v389_v18 = vsel %vm274_vm1, %v375_v13, 0.0 }
  0x60   : > { %v287_v19 = vrot.slane %v286_v15, 4  ;;  %v322_v20 = vrot.slane %v321_v16, 4  ;;  %v356_v21 = vrot.slane %v355_v17, 4  ;;  %v390_v22 = vrot.slane %v389_v18, 4 }
  0x61   : > { %v273_v23 = vsel %vm271_vm2, %v270_v9, 0.0  ;;  %v310_v24 = vsel %vm308_vm3, %v307_v11, 0.0  ;;  %v344_v25 = vsel %vm342_vm4, %v341_v12, 0.0  ;;  %v378_v26 = vsel %vm376_vm5, %v375_v13, 0.0  ;;  %v272_v11 = vld [vmem:[#allocation2] sm:$0x1] }
  0x62   : > { %v288_v27 = vadd.f32 %v287_v19, %v286_v15  ;;  %v323_v28 = vadd.f32 %v322_v20, %v321_v16  ;;  %v357_v29 = vadd.f32 %v356_v21, %v355_v17  ;;  %v391_v30 = vadd.f32 %v390_v22, %v389_v18  ;;  %443 = vadd.xlane.f32.xlu1 %v442_v14  ;;  %v309_v16 = vld [vmem:[#allocation2 + $0x1] sm:$0x1]  ;;  %v343_v17 = vld [vmem:[#allocation2 + $0x2] sm:$0x1]  ;;  %v377_v18 = vld [vmem:[#allocation2 + $0x3] sm:$0x1] }
  0x63   : > { %v275_v31 = vsel %vm274_vm1, %v273_v23, 0.0  ;;  %v311_v32 = vsel %vm274_vm1, %v310_v24, 0.0  ;;  %v345_v33 = vsel %vm274_vm1, %v344_v25, 0.0  ;;  %v379_v34 = vsel %vm274_vm1, %v378_v26, 0.0 }
  0x64   : > { %v289_v35 = vrot.slane %v288_v27, 2  ;;  %v324_v36 = vrot.slane %v323_v28, 2  ;;  %v358_v37 = vrot.slane %v357_v29, 2  ;;  %v392_v38 = vrot.slane %v391_v30, 2 }
  0x65   : > { %v276_v39 = vrot.slane %v275_v31, 4  ;;  %v312_v10 = vrot.slane %v311_v32, 4  ;;  %v346_v40 = vrot.slane %v345_v33, 4  ;;  %v380_v41 = vrot.slane %v379_v34, 4 }
  0x66   : > { %v290_v42 = vadd.f32 %v289_v35, %v288_v27  ;;  %v325_v43 = vadd.f32 %v324_v36, %v323_v28  ;;  %v359_v44 = vadd.f32 %v358_v37, %v357_v29  ;;  %v393_v45 = vadd.f32 %v392_v38, %v391_v30  ;;  %v416_v30 = vld [vmem:[#allocation2 + $0x10] sm:$0xf] }
  0x67   : > { %v277_v48 = vadd.f32 %v276_v39, %v275_v31  ;;  %v313_v49 = vadd.f32 %v312_v10, %v311_v32  ;;  %v347_v50 = vadd.f32 %v346_v40, %v345_v33  ;;  %v381_v51 = vadd.f32 %v380_v41, %v379_v34  ;;  %v418_v33 = vld [vmem:[#allocation2 + $0x18] sm:$0xf] }
  0x68   : > { %v291_v52 = vrot.slane %v290_v42, 1  ;;  %v326_v53 = vrot.slane %v325_v43, 1  ;;  %v360_v55 = vrot.slane %v359_v44, 1  ;;  %v394_v56 = vrot.slane %v393_v45, 1 }
  0x69   : > { %v278_v58 = vrot.slane %v277_v48, 2  ;;  %v314_v59 = vrot.slane %v313_v49, 2  ;;  %v348_v60 = vrot.slane %v347_v50, 2  ;;  %v382_v61 = vrot.slane %v381_v51, 2 }
  0x6a   : > { %v292_v62 = vadd.f32 %v291_v52, %v290_v42  ;;  %v327_v63 = vadd.f32 %v326_v53, %v325_v43  ;;  %v361_v0 = vadd.f32 %v360_v55, %v359_v44  ;;  %v395_v1 = vadd.f32 %v394_v56, %v393_v45 }
  0x6b   : > { %v279_v2 = vadd.f32 %v278_v58, %v277_v48  ;;  %v315_v3 = vadd.f32 %v314_v59, %v313_v49  ;;  %v349_v4 = vadd.f32 %v348_v60, %v347_v50  ;;  %v383_v5 = vadd.f32 %v382_v61, %v381_v51 }
  0x6c   : > { %v293_v6 = vadd.f32 %v292_v62, %v285_v46  ;;  %v328_v7 = vadd.f32 %v327_v63, %v320_v47  ;;  %v362_v8 = vadd.f32 %v361_v0, %v354_v54  ;;  %v396_v9 = vadd.f32 %v395_v1, %v388_v57 }
  0x6d   : > { %v280_v12 = vrot.slane %v279_v2, 1  ;;  %v316_v13 = vrot.slane %v315_v3, 1  ;;  %v350_v14 = vrot.slane %v349_v4, 1  ;;  %v384_v15 = vrot.slane %v383_v5, 1 }
  0x6e   : > { %294 = vst [vmem:[#allocation2 + $0x4] sm:$0x1] %v293_v6  ;;  %329 = vst [vmem:[#allocation2 + $0x5] sm:$0x1] %v328_v7  ;;  %v433_v32 = vsel %vm420_vm0, %v416_v30, 0.0  ;;  %v439_v34 = vsel %vm420_vm0, %v418_v33, 0.0  ;;  %v453_v36 = vlaneseq }
  0x6f   : > { %363 = vst [vmem:[#allocation2 + $0x6] sm:$0x1] %v362_v8  ;;  %397 = vst [vmem:[#allocation2 + $0x7] sm:$0x1] %v396_v9  ;;  %v281_v19 = vadd.f32 %v280_v12, %v279_v2  ;;  %v317_v20 = vadd.f32 %v316_v13, %v315_v3  ;;  %v351_v21 = vadd.f32 %v350_v14, %v349_v4 }
  0x70   : > { %v385_v22 = vadd.f32 %v384_v15, %v383_v5  ;;  %v454_v37 = vand.u32 127, %v453_v36  ;;  %v456_v38 = vshrl.u32 %v453_v36, 7 }
  0x71   : > { %v282_v23 = vadd.f32 %v281_v19, %v272_v11  ;;  %v318_v24 = vadd.f32 %v317_v20, %v309_v16  ;;  %v352_v25 = vadd.f32 %v351_v21, %v343_v17 }
  0x72   : > { %v386_v26 = vadd.f32 %v385_v22, %v377_v18  ;;  %v457_v40 = vsub.s32 %v454_v37, %v456_v38 }
  0x73   : > { %283 = vst [vmem:[#allocation2] sm:$0x1] %v282_v23  ;;  %319 = vst [vmem:[#allocation2 + $0x1] sm:$0x1] %v318_v24 }
  0x74   : > { %353 = vst [vmem:[#allocation2 + $0x2] sm:$0x1] %v352_v25  ;;  %387 = vst [vmem:[#allocation2 + $0x3] sm:$0x1] %v386_v26 }
  0x76   : > { %v413_v27 = vld [vmem:[#allocation2 + $0x4] sm:$0xf] }
  0x77   : > { %v424_v28 = vsel %vm420_vm0, %v413_v27, 0.0 }
  0x78   : > { %425 = vadd.xlane.f32.xlu0 %v424_v28 }
  0x7b   : > { %v412_v29 = vld [vmem:[#allocation2] sm:$0xf] }
  0x7c   : > { %v421_v31 = vsel %vm420_vm0, %v412_v29, 0.0 }
  0x7d   : > { %422 = vadd.xlane.f32.xlu0 %v421_v31 }
  0x81   : > { %434 = vadd.xlane.f32.xlu0 %v433_v32 }
  0x85   : > { %440 = vadd.xlane.f32.xlu0 %v439_v34 }
  0xcb   : > { %v432_v35 = vpop.xlane.xlu1 %431 }
  0xcc   : > { %v470_v46 = vrot.slane %v432_v35, %v457_v40 }
  0xe7   : > { %v429_v39 = vpop.xlane.xlu1 %428 }
  0xe8   : > { %v466_v43 = vrot.slane %v429_v39, %v457_v40 }
  0xeb   : > { %v438_v41 = vpop.xlane.xlu1 %437 }
  0xec   : > { %v478_v53 = vrot.slane %v438_v41, %v457_v40 }
  0xef   : > { %v444_v52 = vpop.xlane.xlu1 %443 }
  0xf0   : > { %v486_v56 = vrot.slane %v444_v52, %v457_v40 }
 0x105   : > { %v426_v10 = vpop.xlane.xlu0 %425 }
 0x106   : > { %v462_v44 = vrot.slane %v426_v10, %v457_v40 }
 0x10a   : > { %v423_v42 = vpop.xlane.xlu0 %422 }
 0x10b   : > { %v458_v45 = vrot.slane %v423_v42, %v457_v40 }
 0x10d   : > { %v488_v47 = vsel %vm487_vm6, %v462_v44, %v458_v45 }
 0x10e   : > { %v490_v48 = vsel %vm489_vm7, %v466_v43, %v488_v47  ;;  %v435_v49 = vpop.xlane.xlu0 %434 }
 0x10f   : > { %v492_v50 = vsel %vm491_vm8, %v470_v46, %v490_v48  ;;  %v474_v51 = vrot.slane %v435_v49, %v457_v40 }
 0x111   : > { %v494_v54 = vsel %vm493_vm9, %v474_v51, %v492_v50 }
 0x112   : > { %v441_v55 = vpop.xlane.xlu0 %440  ;;  %v496_v58 = vsel %vm495_vm10, %v478_v53, %v494_v54 }
 0x113   : > { %v482_v57 = vrot.slane %v441_v55, %v457_v40 }
 0x115   : > { %v498_v59 = vsel %vm497_vm11, %v482_v57, %v496_v58 }
 0x116   : > { %v500_v60 = vsel %vm499_vm12, %v486_v56, %v498_v59 }
 0x117   : > { %503 = vst.msk [vmem:[%s229_s5] sm:$0xff] %vm502_vm13, %v500_v60 }
 0x118 PF: > { %s15_s14 = sadd.s32 1, %s775_s14   ;;  %s975_s9 = smov %s759_s10 }
 0x119   : > { %p12_p7 = scmp.ge.s32.totalorder %s15_s14, 4   ;;  %s976_s10 = smov %s763_s11 }
 0x11a   : > { %s977_s11 = smov %s845_s21  ;;  %s978_s12 = smov %s771_s13 }
 0x11b   : > { %s979_s13 = smov %s981_s16  ;;  %14 = sbr.rel (!%p12_p7) target bundleno = 4 (0x4), region = 84 }
 0x122   :  { %531 = vsyncpa [#allocation4], 1 }
 0x123   :  { %533 = vsyncpa [#allocation4 + $0x1], 1 }

</bundles_post_ra>
